<compile_context>
chip_gen: v5e
topology: v5e:2x2
jax: 0.10.0
libtpu: 0.0.40
codegen_flags: <defaults>
</compile_context>

<pallas_src>
import functools

import jax
import jax.numpy as jnp
from jax.experimental import pallas as pl
from jax.experimental.pallas import tpu as pltpu


def _l2norm_kernel(x_ref, o_ref, acc_ref, *, eps):
    # x_ref:  (B_BLK, C_BLK, HW_TILE) input block
    # o_ref:  (B_BLK, HW_TILE)        output block (resident across the C axis)
    # acc_ref:(B_BLK, HW_TILE) f32    sum-of-squares accumulator
    ci = pl.program_id(2)

    @pl.when(ci == 0)
    def _():
        acc_ref[...] = jnp.zeros_like(acc_ref)

    x = x_ref[...].astype(jnp.float32)
    acc_ref[...] += jnp.sum(x * x, axis=1)          # reduce channel chunk

    @pl.when(ci == pl.num_programs(2) - 1)
    def _():
        o_ref[...] = jnp.sqrt(acc_ref[...] + eps).astype(o_ref.dtype)


# ~4 MiB per in-flight input buffer; the pipeline double-buffers it, which
# still leaves ample headroom under the scoped-VMEM limit on v5e/v6e/v7x.
_VMEM_INPUT_BUDGET = 4 * 1024 * 1024


def _pick_b_blk(B):
    # Output block's second-to-last dim must be a multiple of 8 or equal B.
    return 8 if B % 8 == 0 else B


def _pick_tiles(b_blk, C, HW, itemsize):
    """Choose (c_blk, hw_tile) so the input block fits the VMEM budget."""
    lane_unit = 128 if HW % 128 == 0 else HW        # lane axis: mult of 128 or full
    bytes_per_lane_unit = b_blk * C * lane_unit * itemsize

    if bytes_per_lane_unit <= _VMEM_INPUT_BUDGET:
        # Whole channel axis fits: single reduction step, grow the spatial tile.
        c_blk = C
        max_units = max(1, _VMEM_INPUT_BUDGET // bytes_per_lane_unit)
        hw_tile = min(max_units * lane_unit, HW)
        while HW % hw_tile != 0:                    # keep tiles non-ragged
            hw_tile -= lane_unit
        hw_tile = max(hw_tile, lane_unit)
    else:
        # Channel axis too large: chunk it (input block's second-to-last dim
        # must be a multiple of 8 or the full C), keep a minimal lane tile.
        hw_tile = lane_unit
        sub_unit = 8 if C % 8 == 0 else C
        bytes_per_sub_unit = b_blk * sub_unit * hw_tile * itemsize
        max_sub = max(1, _VMEM_INPUT_BUDGET // bytes_per_sub_unit)
        c_blk = min(max_sub * sub_unit, C)
        while C % c_blk != 0:
            c_blk -= sub_unit
        c_blk = max(c_blk, sub_unit)
    return c_blk, hw_tile


def l2norm(x, *, eps=1e-10):
    """x: (B, C, H, W) -> (B, 1, H, W), reducing over dim=1 (keepdim=True)."""
    B, C, H, W = x.shape
    HW = H * W
    x3 = x.reshape(B, C, HW)                        # free: contiguous collapse

    itemsize = jnp.dtype(x.dtype).itemsize
    b_blk = _pick_b_blk(B)
    c_blk, hw_tile = _pick_tiles(b_blk, C, HW, itemsize)

    grid = (B // b_blk, HW // hw_tile, C // c_blk)
    kernel = functools.partial(_l2norm_kernel, eps=eps)

    out = pl.pallas_call(
        kernel,
        out_shape=jax.ShapeDtypeStruct((B, HW), x.dtype),
        grid_spec=pltpu.PrefetchScalarGridSpec(
            num_scalar_prefetch=0,
            grid=grid,
            in_specs=[
                pl.BlockSpec((b_blk, c_blk, hw_tile),
                             lambda bi, ti, ci: (bi, ci, ti)),
            ],
            out_specs=pl.BlockSpec((b_blk, hw_tile),
                                   lambda bi, ti, ci: (bi, ti)),
            scratch_shapes=[pltpu.VMEM((b_blk, hw_tile), jnp.float32)],
        ),
        compiler_params=pltpu.CompilerParams(
            dimension_semantics=("parallel", "parallel", "arbitrary"),
            vmem_limit_bytes=32 * 1024 * 1024,
        ),
    )(x3)

    return out.reshape(B, 1, H, W)


def l2norm_ref(x, *, eps=1e-10):
    return jnp.sqrt(
        eps + jnp.sum(x.astype(jnp.float32) ** 2, axis=1, keepdims=True)
    ).astype(x.dtype)


if __name__ == "__main__":
    key = jax.random.PRNGKey(0)
    # small NCHW input consistent with the module's default dim=1 reduction
    x = jax.random.normal(key, (2, 4, 16, 16), dtype=jnp.float32)

    out = jax.block_until_ready(l2norm(x))
    ref = l2norm_ref(x)

    assert out.shape == (2, 1, 16, 16), out.shape
    assert jnp.allclose(out, ref, atol=1e-5, rtol=1e-5), "mismatch vs reference"

    print("KERNEL_OK")
</pallas_src>

<mosaic_0001>
module attributes {stable_mosaic.version = 11 : i64} {
  func.func @_l2norm_kernel(%arg0: i32, %arg1: i32, %arg2: i32, %arg3: memref<2x4x256xf32, #tpu.memory_space<vmem>>, %arg4: memref<2x256xf32, #tpu.memory_space<vmem>>, %arg5: memref<2x256xf32, #tpu.memory_space<vmem>>) attributes {dimension_semantics = [#tpu.dimension_semantics<parallel>, #tpu.dimension_semantics<parallel>, #tpu.dimension_semantics<arbitrary>], iteration_bounds = array<i64: 1, 1, 1>, scalar_prefetch = 0 : i64, scratch_operands = 1 : i64, tpu.core_type = #tpu.core_type<tc>, window_params = [{transform_indices = @transform_0, window_bounds = array<i64: 2, 4, 256>}, {transform_indices = @transform_1, window_bounds = array<i64: 2, 256>}]} {
    %c0_i32 = arith.constant 0 : i32
    %0 = arith.cmpi eq, %arg2, %c0_i32 : i32
    %1 = arith.extui %0 : i1 to i32
    %c0_i32_0 = arith.constant 0 : i32
    %2 = arith.cmpi ne, %1, %c0_i32_0 : i32
    scf.if %2 {
      %cst_9 = arith.constant 0.000000e+00 : f32
      %12 = vector.broadcast %cst_9 : f32 to vector<2x256xf32>
      %c0_10 = arith.constant 0 : index
      %c0_11 = arith.constant 0 : index
      %13 = vector.load %arg5[%c0_10, %c0_11] : memref<2x256xf32, #tpu.memory_space<vmem>>, vector<2x256xf32>
      tpu.vector_store %arg5[%c0_10, %c0_11], %12 {strides = array<i32>} : memref<2x256xf32, #tpu.memory_space<vmem>>, vector<2x256xf32>,
    } else {
    }
    %c0 = arith.constant 0 : index
    %c0_1 = arith.constant 0 : index
    %c0_2 = arith.constant 0 : index
    %3 = vector.load %arg3[%c0, %c0_1, %c0_2] : memref<2x4x256xf32, #tpu.memory_space<vmem>>, vector<2x4x256xf32>
    %c0_3 = arith.constant 0 : index
    %c0_4 = arith.constant 0 : index
    %4 = vector.load %arg5[%c0_3, %c0_4] : memref<2x256xf32, #tpu.memory_space<vmem>>, vector<2x256xf32>
    %5 = arith.mulf %3, %3 : vector<2x4x256xf32>
    %cst = arith.constant dense<0.000000e+00> : vector<2x256xf32>
    %6 = vector.multi_reduction <add>, %5, %cst [1] : vector<2x4x256xf32> to vector<2x256xf32>
    %7 = arith.addf %4, %6 : vector<2x256xf32>
    %c0_5 = arith.constant 0 : index
    %c0_6 = arith.constant 0 : index
    %8 = vector.load %arg5[%c0_5, %c0_6] : memref<2x256xf32, #tpu.memory_space<vmem>>, vector<2x256xf32>
    tpu.vector_store %arg5[%c0_5, %c0_6], %7 {strides = array<i32>} : memref<2x256xf32, #tpu.memory_space<vmem>>, vector<2x256xf32>,
    %c0_i32_7 = arith.constant 0 : i32
    %9 = arith.cmpi eq, %arg2, %c0_i32_7 : i32
    %10 = arith.extui %9 : i1 to i32
    %c0_i32_8 = arith.constant 0 : i32
    %11 = arith.cmpi ne, %10, %c0_i32_8 : i32
    scf.if %11 {
      %c0_9 = arith.constant 0 : index
      %c0_10 = arith.constant 0 : index
      %12 = vector.load %arg5[%c0_9, %c0_10] : memref<2x256xf32, #tpu.memory_space<vmem>>, vector<2x256xf32>
      %cst_11 = arith.constant 1.000000e-10 : f32
      %13 = vector.broadcast %cst_11 : f32 to vector<2x256xf32>
      %14 = arith.addf %12, %13 : vector<2x256xf32>
      %15 = math.sqrt %14 : vector<2x256xf32>
      %c0_12 = arith.constant 0 : index
      %c0_13 = arith.constant 0 : index
      %16 = vector.load %arg4[%c0_12, %c0_13] : memref<2x256xf32, #tpu.memory_space<vmem>>, vector<2x256xf32>
      tpu.vector_store %arg4[%c0_12, %c0_13], %15 {strides = array<i32>} : memref<2x256xf32, #tpu.memory_space<vmem>>, vector<2x256xf32>,
    } else {
    }
    return
  }
  func.func @transform_0(%arg0: i32, %arg1: i32, %arg2: i32) -> (i32, i32, i32) {
    %c0_i32 = arith.constant 0 : i32
    return %arg0, %arg2, %arg1 : i32, i32, i32
  }
  func.func @transform_1(%arg0: i32, %arg1: i32, %arg2: i32) -> (i32, i32) {
    %c0_i32 = arith.constant 0 : i32
    return %arg0, %arg1 : i32, i32
  }
}

</mosaic_0001>

<bundles_post_ra>
// kernel: tpu_custom_call.1
= control target key start
LH: loop header
LB: loop body
LE: loop exit
PB: predicated region body
PF: predicated region fallthrough
CT: control target
= control target key end

     0   :  { %6 = vsyncpa [#allocation4], 0  ;;  %s217_s0 = inlined_call_operand.hbm [shape: f32[2,4,256], index: 0, kind: input, shape index: {}]   ;;  %s218_s1 = inlined_call_operand.hbm [shape: f32[2,256], index: 1, kind: output, shape index: {}]  }
   0x1   :  { %7 = vsyncpa [#allocation5], 0  ;;  %s12_s8 = sshll.u32 %s217_s0, 4  ;;  %s196_s9 = smov [#allocation3]   ;;  %s13_s8 = int_to_ptr.hbm [resolvable:$true] %s12_s8 }
   0x2   :  { %s14_s10 = sshll.u32 %s196_s9, 4  ;;  %s197_s11 = smov 128   ;;  %s15_s10 = int_to_ptr.vmem [resolvable:$true] %s14_s10 }
   0x3   :  { %s198_s12 = smov 8  }
   0x4   :  { %20 = dma.hbm_to_vmem [thread:$0]  %s13_s8, 256, %s15_s10, [#allocation4], %s197_s11, %s197_s11, %s198_s12  }
   0x5   :  { %192 = dma.done.wait [#allocation4], 256  }
   0x6   :  { %193 = vsyncadd [#allocation4], 4294967040  ;;  %v199_v0 = vmov 0.0   ;;  %v30_v1 = vld [vmem:[#allocation3] sm:$0xff]  ;;  %v31_v2 = vld [vmem:[#allocation3 + $0x8] sm:$0xff]  ;;  %vm48_vm0 = vcmask 1043456  }
   0x7   :  { %29 = vst [vmem:[#allocation2] sm:$0xf] %v199_v0  ;;  %v33_v3 = vmul.f32 %v30_v1, %v30_v1  ;;  %v34_v4 = vmul.f32 %v31_v2, %v31_v2  ;;  %vm83_vm1 = vcmask 1041408   ;;  %vm91_vm2 = vcmask 1041409   ;;  %s200_s0 = smov [#allocation6]   ;;  %s127_s16 = sshll.u32 %s218_s1, 4  ;;  %s128_s16 = int_to_ptr.hbm [resolvable:$true] %s127_s16 }
   0x8   :  { %vm93_vm3 = vcmask 1043459   ;;  %vm95_vm4 = vcmask 1045509   ;;  %vm97_vm5 = vcmask 1047559   ;;  %s125_s13 = sshll.u32 %s200_s0, 4  ;;  %s126_s13 = int_to_ptr.vmem [resolvable:$true] %s125_s13 }
   0x9   :  { %37 = vst [vmem:[#allocation1] ss:$2 sm:$0xff] %v33_v3 }
   0xa   :  { %41 = vst [vmem:[#allocation1 + $0x10] ss:$2 sm:$0xff] %v34_v4 }
   0xe   :  { %v32_v43 = vld [vmem:[#allocation2] sm:$0xf] }
  0x10   :  { %v38_v5 = vld.sshfl [vmem:[#allocation1] sm:$0xff pattern:$0x75316420]  ;;  %v39_v6 = vld.sshfl [vmem:[#allocation1 + $0x8] sm:$0xff pattern:$0x75316420] }
  0x11   :  { %v42_v7 = vld.sshfl [vmem:[#allocation1 + $0x10] sm:$0xff pattern:$0x75316420]  ;;  %v43_v8 = vld.sshfl [vmem:[#allocation1 + $0x18] sm:$0xff pattern:$0x75316420] }
  0x12   :  { %v49_v9 = vsel %vm48_vm0, %v38_v5, 0.0  ;;  %v56_v10 = vsel %vm48_vm0, %v39_v6, 0.0  ;;  %v63_v11 = vsel %vm48_vm0, %v42_v7, 0.0  ;;  %v70_v12 = vsel %vm48_vm0, %v43_v8, 0.0 }
  0x13   :  { %v50_v13 = vrot.slane %v49_v9, 4  ;;  %v57_v14 = vrot.slane %v56_v10, 4  ;;  %v64_v15 = vrot.slane %v63_v11, 4  ;;  %v71_v16 = vrot.slane %v70_v12, 4 }
  0x15   :  { %v51_v17 = vadd.f32 %v50_v13, %v49_v9  ;;  %v58_v18 = vadd.f32 %v57_v14, %v56_v10  ;;  %v65_v19 = vadd.f32 %v64_v15, %v63_v11  ;;  %v72_v20 = vadd.f32 %v71_v16, %v70_v12 }
  0x17   :  { %v52_v21 = vrot.slane %v51_v17, 2  ;;  %v59_v22 = vrot.slane %v58_v18, 2  ;;  %v66_v23 = vrot.slane %v65_v19, 2  ;;  %v73_v24 = vrot.slane %v72_v20, 2 }
  0x19   :  { %v53_v25 = vadd.f32 %v52_v21, %v51_v17  ;;  %v60_v26 = vadd.f32 %v59_v22, %v58_v18  ;;  %v67_v27 = vadd.f32 %v66_v23, %v65_v19  ;;  %v74_v28 = vadd.f32 %v73_v24, %v72_v20 }
  0x1b   :  { %v61_v29 = vrot.slane %v60_v26, 1  ;;  %v68_v30 = vrot.slane %v67_v27, 1  ;;  %v75_v31 = vrot.slane %v74_v28, 1  ;;  %v54_v32 = vrot.slane %v53_v25, 1 }
  0x1d   :  { %v62_v33 = vadd.f32 %v61_v29, %v60_v26  ;;  %v76_v34 = vadd.f32 %v75_v31, %v74_v28  ;;  %v69_v35 = vadd.f32 %v68_v30, %v67_v27  ;;  %v55_v38 = vadd.f32 %v54_v32, %v53_v25 }
  0x1f   :  { %v81_v36 = vrot.slane %v62_v33, 6  ;;  %v82_v37 = vrot.slane %v76_v34, 6 }
  0x21   :  { %v85_v39 = vsel %vm83_vm1, %v69_v35, %v82_v37  ;;  %v84_v41 = vsel %vm83_vm1, %v55_v38, %v81_v36 }
  0x22   :  { %v90_v40 = vrot.slane %v85_v39, 7 }
  0x24   :  { %v92_v42 = vsel %vm91_vm2, %v90_v40, %v84_v41 }
  0x25   :  { %v94_v44 = vsel %vm93_vm3, %v90_v40, %v92_v42 }
  0x26   :  { %v96_v45 = vsel %vm95_vm4, %v90_v40, %v94_v44 }
  0x27   :  { %v98_v46 = vsel %vm97_vm5, %v90_v40, %v96_v45 }
  0x28   :  { %v100_v47 = vadd.f32 %v98_v46, %v32_v43 }
  0x2a   :  { %101 = vst [vmem:[#allocation2] sm:$0xf] %v100_v47 }
  0x31   :  { %v105_v48 = vld [vmem:[#allocation2] sm:$0xf] }
  0x32   :  { %v106_v49 = vadd.f32 1e-10, %v105_v48 }
  0x34   :  { %142 = vrsqrt.f32 %v106_v49  ;;  %vm114_vm6 = vcmp.eq.f32.partialorder %v106_v49, inf  ;;  %v117_v57 = vand.u32 2147483648, %v106_v49  ;;  %vm116_vm7 = vcmp.eq.f32.partialorder %v106_v49, 0.0 }
  0x3a   :  { %v143_v50 = vpop.eup %142 }
  0x3b   :  { %v108_v51 = vmul.f32 %v143_v50, %v106_v49 }
  0x3d   :  { %v109_v52 = vmul.f32 %v143_v50, %v108_v51 }
  0x3f   :  { %v110_v53 = vmul.f32 0.5, %v109_v52 }
  0x41   :  { %v111_v54 = vsub.f32 1.5, %v110_v53 }
  0x43   :  { %v112_v55 = vmul.f32 %v143_v50, %v111_v54 }
  0x45   :  { %v113_v56 = vmul.f32 %v112_v55, %v106_v49 }
  0x47   :  { %v115_v58 = vsel %vm114_vm6, %v106_v49, %v113_v56 }
  0x48   :  { %v118_v59 = vsel %vm116_vm7, %v117_v57, %v115_v58 }
  0x49   :  { %119 = vst [vmem:[#allocation6] sm:$0xf] %v118_v59 }
  0x4a   :  { %130 = dma.vmem_to_hbm [thread:$0]  %s126_s13, 64, %s128_s16, [#allocation5]  }
  0x4b   :  { %194 = dma.done.wait [#allocation5], 64  }
  0x4c   :  { %195 = vsyncadd [#allocation5], 4294967232 }
  0x4d   :  { %135 = vsyncpa [#allocation4], 1 }
  0x4e   :  { %136 = vsyncpa [#allocation5], 1 }

</bundles_post_ra>
